<compile_context>
chip_gen: v6e
topology: v6e:2x2x1
jax: 0.10.0
libtpu: 0.0.40
codegen_flags: <defaults>
</compile_context>

<pallas_src>
import jax
import jax.numpy as jnp
from jax.experimental import pallas as pl
from jax.experimental.pallas import tpu as pltpu

INPUT_SIZE = 8
HIDDEN = (16, 12, 8, 6)
OUTPUT_SIZE = 1
N_LAYERS = 5
PF = 16                      # padded feature width (max layer width)
BN_EPS = 1e-5
MAX_TILE_B = 4096            # batch rows (lanes) per grid step; activations
                             # (16 x 4096 f32 = 256 KiB) + double-buffered x
                             # stay far under the 32 MiB scoped-VMEM default
                             # (and v7x's 64 MiB physical VMEM).


def _round_up(n, m):
    return ((n + m - 1) // m) * m


def _mlp_kernel(x_ref, w_ref, b_ref, o_ref):
    """One batch tile.  Layout: features on sublanes, batch on lanes.

    x_ref: (INPUT_SIZE, TILE_B)   bf16
    w_ref: (N_LAYERS, PF, PF)     bf16   (BN folded, zero padded)
    b_ref: (N_LAYERS, PF, 1)      f32    (BN folded, zero padded)
    o_ref: (OUTPUT_SIZE, TILE_B)  f32
    """
    # fc1 + relu1  (bn1 is folded into fc2's weights/bias)
    h = jnp.dot(w_ref[0, :, :INPUT_SIZE], x_ref[...],
                preferred_element_type=jnp.float32) + b_ref[0]
    h = jnp.maximum(h, 0.0)

    # fc2..fc4 (+ relu; bn_{i-1} folded in; dropout is identity in eval mode)
    for li in range(1, N_LAYERS - 1):
        h = jnp.dot(w_ref[li], h.astype(jnp.bfloat16),
                    preferred_element_type=jnp.float32) + b_ref[li]
        h = jnp.maximum(h, 0.0)

    # fc5 (bn4 folded in): only the real output row is computed/stored.
    out = jnp.dot(w_ref[N_LAYERS - 1, :OUTPUT_SIZE, :], h.astype(jnp.bfloat16),
                  preferred_element_type=jnp.float32)
    o_ref[...] = out + b_ref[N_LAYERS - 1, :OUTPUT_SIZE, :]


def improved_neural_net_forward(x, wpack, bpack, *, tile_b=MAX_TILE_B):
    """x: (batch, INPUT_SIZE) f32 -> (batch, OUTPUT_SIZE) f32."""
    batch = x.shape[0]
    tile_b = min(tile_b, _round_up(max(batch, 1), 128))
    batch_p = _round_up(batch, tile_b)

    # Lane-dense layout: batch on the 128-lane axis (layout plumbing only).
    x_t = jnp.transpose(x).astype(jnp.bfloat16)            # (IN, batch)
    x_t = jnp.pad(x_t, ((0, 0), (0, batch_p - batch)))     # (IN, batch_p)

    out = pl.pallas_call(
        _mlp_kernel,
        out_shape=jax.ShapeDtypeStruct((OUTPUT_SIZE, batch_p), jnp.float32),
        grid_spec=pltpu.PrefetchScalarGridSpec(
            num_scalar_prefetch=0,
            grid=(batch_p // tile_b,),
            in_specs=[
                pl.BlockSpec((INPUT_SIZE, tile_b), lambda i: (0, i)),
                # constant index_maps -> parameters DMA'd once, stay resident
                pl.BlockSpec((N_LAYERS, PF, PF), lambda i: (0, 0, 0)),
                pl.BlockSpec((N_LAYERS, PF, 1), lambda i: (0, 0, 0)),
            ],
            out_specs=pl.BlockSpec((OUTPUT_SIZE, tile_b), lambda i: (0, i)),
        ),
        compiler_params=pltpu.CompilerParams(
            dimension_semantics=("parallel",),   # shards tiles across v7x's 2 TCs
            vmem_limit_bytes=32 * 1024 * 1024,
        ),
    )(x_t, wpack, bpack)

    return jnp.transpose(out[:, :batch])                    # (batch, 1)


def _init_raw_params(key):
    """PyTorch-layout params: Linear W (out,in), b (out,); BN gamma/beta/mean/var."""
    dims = [INPUT_SIZE, *HIDDEN, OUTPUT_SIZE]
    keys = jax.random.split(key, 6 * N_LAYERS)
    ki = iter(range(len(keys)))
    layers = []
    for li in range(N_LAYERS):
        fan_in, fan_out = dims[li], dims[li + 1]
        bound = 1.0 / jnp.sqrt(fan_in)
        w = jax.random.uniform(keys[next(ki)], (fan_out, fan_in),
                               minval=-bound, maxval=bound, dtype=jnp.float32)
        b = jax.random.uniform(keys[next(ki)], (fan_out,),
                               minval=-bound, maxval=bound, dtype=jnp.float32)
        if li < N_LAYERS - 1:  # BatchNorm1d after fc1..fc4 (eval statistics)
            gamma = 1.0 + 0.1 * jax.random.normal(keys[next(ki)], (fan_out,), jnp.float32)
            beta = 0.1 * jax.random.normal(keys[next(ki)], (fan_out,), jnp.float32)
            mean = 0.1 * jax.random.normal(keys[next(ki)], (fan_out,), jnp.float32)
            var = jnp.abs(1.0 + 0.1 * jax.random.normal(keys[next(ki)], (fan_out,), jnp.float32))
            bn = (gamma, beta, mean, var)
        else:
            bn = None
        layers.append((w, b, bn))
    return layers


def _fold_and_pack(layers):
    """Fold eval-mode BN after relu_i into fc_{i+1}; zero-pad into packed arrays."""
    folded = []
    pending_scale = pending_shift = None
    for (w, b, bn) in layers:
        if pending_scale is not None:
            # W @ (s*h + t) + b  ==  (W*s) @ h + (W @ t + b)
            b = w @ pending_shift + b
            w = w * pending_scale[None, :]
        if bn is not None:
            gamma, beta, mean, var = bn
            s = gamma / jnp.sqrt(var + BN_EPS)
            t = beta - mean * s
            pending_scale, pending_shift = s, t
        else:
            pending_scale = pending_shift = None
        folded.append((w, b))

    wpack = jnp.zeros((N_LAYERS, PF, PF), jnp.float32)
    bpack = jnp.zeros((N_LAYERS, PF, 1), jnp.float32)
    for li, (w, b) in enumerate(folded):
        out_f, in_f = w.shape
        wpack = wpack.at[li, :out_f, :in_f].set(w)
        bpack = bpack.at[li, :out_f, 0].set(b)
    return wpack.astype(jnp.bfloat16), bpack, folded


def _reference_eval(x, layers):
    """Pure-f32 eval-mode forward, mirroring the PyTorch module exactly."""
    h = x
    for (w, b, bn) in layers:
        h = h @ w.T + b
        if bn is not None:
            gamma, beta, mean, var = bn
            h = jnp.maximum(h, 0.0)
            h = (h - mean) / jnp.sqrt(var + BN_EPS) * gamma + beta
        # Dropout(p=0.01) is identity in eval mode.
    return h


def _reference_folded(x, folded, use_bf16):
    """Reference with BN folded in; optionally mirrors the kernel's bf16 matmuls."""
    h = x
    for li, (w, b) in enumerate(folded):
        if use_bf16:
            z = jnp.dot(h.astype(jnp.bfloat16), w.astype(jnp.bfloat16).T,
                        preferred_element_type=jnp.float32) + b
        else:
            z = h @ w.T + b
        h = jnp.maximum(z, 0.0) if li < N_LAYERS - 1 else z
    return h


if __name__ == "__main__":
    key = jax.random.PRNGKey(0)
    k_x, k_p = jax.random.split(key)
    batch = 200                                   # exercises lane padding (200 -> 256)
    x = jax.random.normal(k_x, (batch, INPUT_SIZE), dtype=jnp.float32)

    layers = _init_raw_params(k_p)
    wpack, bpack, folded = _fold_and_pack(layers)

    out = improved_neural_net_forward(x, wpack, bpack)
    out = jax.block_until_ready(out)
    assert out.shape == (batch, OUTPUT_SIZE)

    # 1) BN-folding algebra matches the unfolded eval-mode module math (pure f32).
    ref_eval = _reference_eval(x, layers)
    ref_fold_f32 = _reference_folded(x, folded, use_bf16=False)
    assert jnp.allclose(ref_fold_f32, ref_eval, atol=1e-4, rtol=1e-4)

    # 2) Kernel matches a reference mirroring its bf16-matmul / f32-accumulate math.
    ref_fold_bf16 = _reference_folded(x, folded, use_bf16=True)
    assert jnp.allclose(out, ref_fold_bf16, atol=1e-3, rtol=1e-3), (
        jnp.max(jnp.abs(out - ref_fold_bf16)))

    print("KERNEL_OK")
</pallas_src>

<mosaic_0001>
module attributes {stable_mosaic.version = 11 : i64} {
  func.func @_mlp_kernel(%arg0: i32, %arg1: memref<8x256xbf16, #tpu.memory_space<vmem>>, %arg2: memref<5x16x16xbf16, #tpu.memory_space<vmem>>, %arg3: memref<5x16x1xf32, #tpu.memory_space<vmem>>, %arg4: memref<1x256xf32, #tpu.memory_space<vmem>>) attributes {dimension_semantics = [#tpu.dimension_semantics<parallel>], iteration_bounds = array<i64: 1>, scalar_prefetch = 0 : i64, scratch_operands = 0 : i64, tpu.core_type = #tpu.core_type<tc>, window_params = [{transform_indices = @transform_0, window_bounds = array<i64: 8, 256>}, {pipeline_mode = #tpu.pipeline_mode<synchronous>, transform_indices = @transform_1, window_bounds = array<i64: 5, 16, 16>}, {pipeline_mode = #tpu.pipeline_mode<synchronous>, transform_indices = @transform_2, window_bounds = array<i64: 5, 16, 1>}, {transform_indices = @transform_3, window_bounds = array<i64: 1, 256>}]} {
    %c0 = arith.constant 0 : index
    %c0_0 = arith.constant 0 : index
    %c0_1 = arith.constant 0 : index
    %0 = vector.load %arg2[%c0, %c0_0, %c0_1] : memref<5x16x16xbf16, #tpu.memory_space<vmem>>, vector<1x16x8xbf16>
    %1 = vector.shape_cast %0 : vector<1x16x8xbf16> to vector<16x8xbf16>
    %c0_2 = arith.constant 0 : index
    %c0_3 = arith.constant 0 : index
    %2 = vector.load %arg1[%c0_2, %c0_3] : memref<8x256xbf16, #tpu.memory_space<vmem>>, vector<8x256xbf16>
    %cst = arith.constant dense<0.000000e+00> : vector<16x256xf32>
    %3 = tpu.matmul %1, %2, %cst {dimension_numbers = #tpu.dot_dimension_numbers<[1], [0], [0], [1], [0, 0, 1, 1], [], []>} : vector<16x8xbf16>, vector<8x256xbf16>, vector<16x256xf32> -> vector<16x256xf32>
    %c0_4 = arith.constant 0 : index
    %c0_5 = arith.constant 0 : index
    %c0_6 = arith.constant 0 : index
    %4 = vector.load %arg3[%c0_4, %c0_5, %c0_6] : memref<5x16x1xf32, #tpu.memory_space<vmem>>, vector<1x16x1xf32>
    %5 = vector.shape_cast %4 : vector<1x16x1xf32> to vector<16x1xf32>
    %6 = vector.broadcast %5 : vector<16x1xf32> to vector<16x256xf32>
    %7 = arith.addf %3, %6 : vector<16x256xf32>
    %cst_7 = arith.constant 0.000000e+00 : f32
    %8 = vector.broadcast %cst_7 : f32 to vector<16x256xf32>
    %9 = arith.maximumf %7, %8 : vector<16x256xf32>
    %c1 = arith.constant 1 : index
    %c0_8 = arith.constant 0 : index
    %c0_9 = arith.constant 0 : index
    %10 = vector.load %arg2[%c1, %c0_8, %c0_9] : memref<5x16x16xbf16, #tpu.memory_space<vmem>>, vector<1x16x16xbf16>
    %11 = vector.shape_cast %10 : vector<1x16x16xbf16> to vector<16x16xbf16>
    %12 = arith.truncf %9 : vector<16x256xf32> to vector<16x256xbf16>
    %cst_10 = arith.constant dense<0.000000e+00> : vector<16x256xf32>
    %13 = tpu.matmul %11, %12, %cst_10 {dimension_numbers = #tpu.dot_dimension_numbers<[1], [0], [0], [1], [0, 0, 1, 1], [], []>} : vector<16x16xbf16>, vector<16x256xbf16>, vector<16x256xf32> -> vector<16x256xf32>
    %c1_11 = arith.constant 1 : index
    %c0_12 = arith.constant 0 : index
    %c0_13 = arith.constant 0 : index
    %14 = vector.load %arg3[%c1_11, %c0_12, %c0_13] : memref<5x16x1xf32, #tpu.memory_space<vmem>>, vector<1x16x1xf32>
    %15 = vector.shape_cast %14 : vector<1x16x1xf32> to vector<16x1xf32>
    %16 = vector.broadcast %15 : vector<16x1xf32> to vector<16x256xf32>
    %17 = arith.addf %13, %16 : vector<16x256xf32>
    %cst_14 = arith.constant 0.000000e+00 : f32
    %18 = vector.broadcast %cst_14 : f32 to vector<16x256xf32>
    %19 = arith.maximumf %17, %18 : vector<16x256xf32>
    %c2 = arith.constant 2 : index
    %c0_15 = arith.constant 0 : index
    %c0_16 = arith.constant 0 : index
    %20 = vector.load %arg2[%c2, %c0_15, %c0_16] : memref<5x16x16xbf16, #tpu.memory_space<vmem>>, vector<1x16x16xbf16>
    %21 = vector.shape_cast %20 : vector<1x16x16xbf16> to vector<16x16xbf16>
    %22 = arith.truncf %19 : vector<16x256xf32> to vector<16x256xbf16>
    %cst_17 = arith.constant dense<0.000000e+00> : vector<16x256xf32>
    %23 = tpu.matmul %21, %22, %cst_17 {dimension_numbers = #tpu.dot_dimension_numbers<[1], [0], [0], [1], [0, 0, 1, 1], [], []>} : vector<16x16xbf16>, vector<16x256xbf16>, vector<16x256xf32> -> vector<16x256xf32>
    %c2_18 = arith.constant 2 : index
    %c0_19 = arith.constant 0 : index
    %c0_20 = arith.constant 0 : index
    %24 = vector.load %arg3[%c2_18, %c0_19, %c0_20] : memref<5x16x1xf32, #tpu.memory_space<vmem>>, vector<1x16x1xf32>
    %25 = vector.shape_cast %24 : vector<1x16x1xf32> to vector<16x1xf32>
    %26 = vector.broadcast %25 : vector<16x1xf32> to vector<16x256xf32>
    %27 = arith.addf %23, %26 : vector<16x256xf32>
    %cst_21 = arith.constant 0.000000e+00 : f32
    %28 = vector.broadcast %cst_21 : f32 to vector<16x256xf32>
    %29 = arith.maximumf %27, %28 : vector<16x256xf32>
    %c3 = arith.constant 3 : index
    %c0_22 = arith.constant 0 : index
    %c0_23 = arith.constant 0 : index
    %30 = vector.load %arg2[%c3, %c0_22, %c0_23] : memref<5x16x16xbf16, #tpu.memory_space<vmem>>, vector<1x16x16xbf16>
    %31 = vector.shape_cast %30 : vector<1x16x16xbf16> to vector<16x16xbf16>
    %32 = arith.truncf %29 : vector<16x256xf32> to vector<16x256xbf16>
    %cst_24 = arith.constant dense<0.000000e+00> : vector<16x256xf32>
    %33 = tpu.matmul %31, %32, %cst_24 {dimension_numbers = #tpu.dot_dimension_numbers<[1], [0], [0], [1], [0, 0, 1, 1], [], []>} : vector<16x16xbf16>, vector<16x256xbf16>, vector<16x256xf32> -> vector<16x256xf32>
    %c3_25 = arith.constant 3 : index
    %c0_26 = arith.constant 0 : index
    %c0_27 = arith.constant 0 : index
    %34 = vector.load %arg3[%c3_25, %c0_26, %c0_27] : memref<5x16x1xf32, #tpu.memory_space<vmem>>, vector<1x16x1xf32>
    %35 = vector.shape_cast %34 : vector<1x16x1xf32> to vector<16x1xf32>
    %36 = vector.broadcast %35 : vector<16x1xf32> to vector<16x256xf32>
    %37 = arith.addf %33, %36 : vector<16x256xf32>
    %cst_28 = arith.constant 0.000000e+00 : f32
    %38 = vector.broadcast %cst_28 : f32 to vector<16x256xf32>
    %39 = arith.maximumf %37, %38 : vector<16x256xf32>
    %c4 = arith.constant 4 : index
    %c0_29 = arith.constant 0 : index
    %c0_30 = arith.constant 0 : index
    %40 = vector.load %arg2[%c4, %c0_29, %c0_30] : memref<5x16x16xbf16, #tpu.memory_space<vmem>>, vector<1x1x16xbf16>
    %41 = vector.shape_cast %40 : vector<1x1x16xbf16> to vector<1x16xbf16>
    %42 = arith.truncf %39 : vector<16x256xf32> to vector<16x256xbf16>
    %cst_31 = arith.constant dense<0.000000e+00> : vector<1x256xf32>
    %43 = tpu.matmul %41, %42, %cst_31 {dimension_numbers = #tpu.dot_dimension_numbers<[1], [0], [0], [1], [0, 0, 1, 1], [], []>} : vector<1x16xbf16>, vector<16x256xbf16>, vector<1x256xf32> -> vector<1x256xf32>
    %c4_32 = arith.constant 4 : index
    %c0_33 = arith.constant 0 : index
    %c0_34 = arith.constant 0 : index
    %44 = vector.load %arg3[%c4_32, %c0_33, %c0_34] : memref<5x16x1xf32, #tpu.memory_space<vmem>>, vector<1x1x1xf32>
    %45 = vector.shape_cast %44 : vector<1x1x1xf32> to vector<1x1xf32>
    %46 = vector.broadcast %45 : vector<1x1xf32> to vector<1x256xf32>
    %47 = arith.addf %43, %46 : vector<1x256xf32>
    %c0_35 = arith.constant 0 : index
    %c0_36 = arith.constant 0 : index
    %48 = vector.load %arg4[%c0_35, %c0_36] : memref<1x256xf32, #tpu.memory_space<vmem>>, vector<1x256xf32>
    tpu.vector_store %arg4[%c0_35, %c0_36], %47 {strides = array<i32>} : memref<1x256xf32, #tpu.memory_space<vmem>>, vector<1x256xf32>,
    return
  }
  func.func @transform_0(%arg0: i32) -> (i32, i32) {
    %c0_i32 = arith.constant 0 : i32
    %c0_i32_0 = arith.constant 0 : i32
    return %c0_i32, %arg0 : i32, i32
  }
  func.func @transform_1(%arg0: i32) -> (i32, i32, i32) {
    %c0_i32 = arith.constant 0 : i32
    %c0_i32_0 = arith.constant 0 : i32
    %c0_i32_1 = arith.constant 0 : i32
    %c0_i32_2 = arith.constant 0 : i32
    return %c0_i32, %c0_i32_0, %c0_i32_1 : i32, i32, i32
  }
  func.func @transform_2(%arg0: i32) -> (i32, i32, i32) {
    %c0_i32 = arith.constant 0 : i32
    %c0_i32_0 = arith.constant 0 : i32
    %c0_i32_1 = arith.constant 0 : i32
    %c0_i32_2 = arith.constant 0 : i32
    return %c0_i32, %c0_i32_0, %c0_i32_1 : i32, i32, i32
  }
  func.func @transform_3(%arg0: i32) -> (i32, i32) {
    %c0_i32 = arith.constant 0 : i32
    %c0_i32_0 = arith.constant 0 : i32
    return %c0_i32, %arg0 : i32, i32
  }
}

</mosaic_0001>

<bundles_post_ra>
// kernel: tpu_custom_call.1
= control target key start
LH: loop header
LB: loop body
LE: loop exit
PB: predicated region body
PF: predicated region fallthrough
CT: control target
= control target key end

     0   :  { %vm45_vm0 = vcmask 1043456   ;;  %v470_v3 = vmov 0   ;;  %vm41_vm1 = vcmask 64512   ;;  %s552_s0 = inlined_call_operand.vmem [shape: bf16[8,256], index: 0, kind: input, shape index: {}]   ;;  %s553_s1 = inlined_call_operand.vmem [shape: bf16[5,16,16], index: 1, kind: input, shape index: {}]   ;;  %s554_s2 = inlined_call_operand.vmem [shape: f32[5,16,1], index: 2, kind: input, shape index: {}]   ;;  %s555_s3 = inlined_call_operand.hbm [shape: f32[1,256], index: 3, kind: output, shape index: {}]  }
   0x1   :  { %v18_v0 = vld [vmem:[%s552_s0] sm:$0xff]  ;;  %84 = vmatprep.mubr.bf16.mxu0 %v470_v3  ;;  %440 = vset.pattern.permute.xlu0 %v470_v3  ;;  %v20_v7 = vld [vmem:[%s554_s2 + $0x8] sm:$0xff] }
   0x2   :  { %v413_v1 = vcombine.high %v18_v0, %v18_v0  ;;  %v412_v2 = vcombine.low %v18_v0, %v18_v0  ;;  %v19_v4 = vld [vmem:[%s554_s2] sm:$0xff]  ;;  %158 = vmatprep.mubr.bf16.mxu1 %v470_v3  ;;  %441 = vset.pattern.permute.xlu1 %v470_v3 }
   0x3   :  { %v444_v5 = vld [vmem:[%s553_s1] sm:$0xff]   ;;  %23 = vperm.xlu0 %440, %v19_v4  }
   0x4   :  { %414 = vmatprep.subr.msk.bf16.mxu0 %vm45_vm0, %v413_v1  ;;  %v47_v6 = vsel %vm45_vm0, %v412_v2, 0 }
   0x5   :  { %67 = vmatpush1.bf16.msra.mxu0 %v47_v6 }
   0x6   :  { %8 = vsyncpa [#allocation3], 0  ;;  %v424_v8 = vld [vmem:[%s554_s2 + $0x20] sm:$0xff]  ;;  %v430_v9 = vld [vmem:[%s554_s2 + $0x30] sm:$0xff]  ;;  %vm122_vm2 = vcmask 130048   ;;  %s472_s13 = smov [#allocation2]  }
   0x7   :  { %28 = vperm.xlu0 %440, %v20_v7   ;;  %v435_v10 = vld [vmem:[%s554_s2 + $0x40] sm:$0x1]  ;;  %v418_v11 = vld [vmem:[%s554_s2 + $0x10] sm:$0xff]  ;;  %v419_v12 = vld [vmem:[%s554_s2 + $0x18] sm:$0xff]  ;;  %s403_s14 = sshll.u32 %s472_s13, 4  ;;  %s404_s14 = int_to_ptr.vmem [resolvable:$true] %s403_s14 }
   0x8   :  { %415 = vmatmul.mubr.msk.bf16.vlgmr.msra.gmra.mxu0 %vm41_vm1, %v444_v5  ;;  %109 = vperm.xlu1 %441, %v418_v11   ;;  %v425_v13 = vld [vmem:[%s554_s2 + $0x28] sm:$0xff]  ;;  %v431_v14 = vld [vmem:[%s554_s2 + $0x38] sm:$0xff]  ;;  %v446_v48 = vld [vmem:[%s553_s1 + $0x10] sm:$0xff]   ;;  %p453_p1 = scmp.lt.s32.totalorder %s404_s14, %s404_s14 }
   0x9   :  { %231 = vmatprep.mubr.bf16.mxu0 %v470_v3  ;;  %v445_v31 = vld [vmem:[%s553_s1 + $0x8] sm:$0xff]   ;;  %v447_v1 = vld [vmem:[%s553_s1 + $0x18] sm:$0xff]  }
   0xb   :  { %183 = vperm.xlu0 %440, %v424_v8  }
   0xc   :  { %114 = vperm.xlu1 %441, %v419_v12  }
   0xf   :  { %256 = vperm.xlu0 %440, %v430_v9  }
  0x10   :  { %188 = vperm.xlu1 %441, %v425_v13  }
  0x13   :  { %327 = vperm.xlu0 %440, %v435_v10  }
  0x14   :  { %261 = vperm.xlu1 %441, %v431_v14  }
  0x7e   :  { %v24_v15 = vpop.permute.xlu0 %23 }
  0x82   :  { %v29_v18 = vpop.permute.xlu0 %28 }
  0x83   :  { %v110_v32 = vpop.permute.xlu1 %109 }
  0x86   :  { %v184_v51 = vpop.permute.xlu0 %183 }
  0x87   :  { %v115_v35 = vpop.permute.xlu1 %114 }
  0x8a   :  { %v257_v4 = vpop.permute.xlu0 %256 }
  0x8b   :  { %v189_v52 = vpop.permute.xlu1 %188 }
  0x8f   :  { %v262_v5 = vpop.permute.xlu1 %261 }
  0xc8   :  { %v86_v16 = vpop.f32.mrf.mxu0 }
  0xc9   :  { %v87_v22 = vadd.f32 %v86_v16, %v24_v15 }
  0xca   :  { %v88_v17 = vpop.f32.mrf.mxu0 }
  0xcb   :  { %v89_v20 = vadd.f32 %v88_v17, %v24_v15  ;;  %v95_v28 = vmax.f32 %v87_v22, 0.0 }
  0xcc   :  { %v90_v19 = vpop.f32.mrf.mxu0 }
  0xcd   :  { %v91_v21 = vadd.f32 %v90_v19, %v29_v18  ;;  %v96_v26 = vmax.f32 %v89_v20, 0.0  ;;  %v471_v19 = vmov 1966171168  }
  0xce   :  { %v92_v23 = vpop.f32.mrf.mxu0  ;;  %v378_v20 = vunpack.c.l.s4 %v471_v19 }
  0xcf   :  { %v93_v24 = vadd.f32 %v92_v23, %v29_v18  ;;  %v97_v25 = vmax.f32 %v91_v21, 0.0  ;;  %v434_v18 = vld [vmem:[%s553_s1 + $0x20] sm:$0x1]  ;;  %v380_v21 = vlaneseq  ;;  %s448_s1 = scalar_lea.vmem %s404_s14, 32 }
  0xd0   :  { %v379_v22 = vunpack.c.0.s8 %v378_v20  ;;  %p449_p0 = scmp.ne.s32.totalorder %s404_s14, %s448_s1  ;;  %p454_p2 = scmp.lt.s32.totalorder %s448_s1, %s448_s1 }
  0xd1   :  { %v98_v27 = vmax.f32 %v93_v24, 0.0  ;;  %v102_v30 = vpack.c.bf16 %v97_v25, %v95_v28  ;;  %v381_v23 = vshrl.u32 %v380_v21, 7  ;;  %v328_v25 = vpop.permute.xlu0 %327  ;;  %vm394_vm3 = vcmp.lt.s32.totalorder %v380_v21, 256 }
  0xd2   :  { %p455_p3 = por %p454_p2, %p453_p1 }
  0xd3   :  { %v103_v29 = vpack.c.bf16 %v98_v27, %v96_v26 }
  0xd4   :  { %p456_p4 = pnand %p455_p3, %p449_p0 }
  0xd5   :  { %140 = vmatprep.subr.bf16.mxu1 %v103_v29  ;;  %v382_v29 = vsub.s32 %v379_v22, %v381_v23 }
  0xd6   :  { %141 = vmatpush1.bf16.msra.mxu1 %v102_v30 }
  0xd9   :  { %421 = vmatmul.mubr.msk.bf16.vlgmr.msra.gmra.mxu1 %vm122_vm2, %v445_v31 }
  0xda   :  { %304 = vmatprep.mubr.bf16.mxu1 %v470_v3 }
 0x199   :  { %v160_v33 = vpop.f32.mrf.mxu1 }
 0x19a   :  { %v161_v39 = vadd.f32 %v160_v33, %v110_v32 }
 0x19b   :  { %v162_v34 = vpop.f32.mrf.mxu1 }
 0x19c   :  { %v163_v37 = vadd.f32 %v162_v34, %v110_v32  ;;  %v169_v45 = vmax.f32 %v161_v39, 0.0 }
 0x19d   :  { %v164_v36 = vpop.f32.mrf.mxu1 }
 0x19e   :  { %v165_v38 = vadd.f32 %v164_v36, %v115_v35  ;;  %v170_v43 = vmax.f32 %v163_v37, 0.0 }
 0x19f   :  { %v166_v40 = vpop.f32.mrf.mxu1 }
 0x1a0   :  { %v167_v41 = vadd.f32 %v166_v40, %v115_v35  ;;  %v171_v42 = vmax.f32 %v165_v38, 0.0 }
 0x1a2   :  { %v172_v44 = vmax.f32 %v167_v41, 0.0  ;;  %v176_v47 = vpack.c.bf16 %v171_v42, %v169_v45 }
 0x1a4   :  { %v177_v46 = vpack.c.bf16 %v172_v44, %v170_v43 }
 0x1a6   :  { %213 = vmatprep.subr.bf16.mxu0 %v177_v46 }
 0x1a7   :  { %214 = vmatpush1.bf16.msra.mxu0 %v176_v47 }
 0x1aa   :  { %427 = vmatmul.mubr.msk.bf16.vlgmr.msra.gmra.mxu0 %vm122_vm2, %v446_v48 }
 0x1ab   :  { %365 = vmatprep.mubr.bf16.mxu0 %v470_v3 }
 0x26a   :  { %v233_v49 = vpop.f32.mrf.mxu0 }
 0x26b   :  { %v234_v56 = vadd.f32 %v233_v49, %v184_v51 }
 0x26c   :  { %v235_v50 = vpop.f32.mrf.mxu0 }
 0x26d   :  { %v236_v54 = vadd.f32 %v235_v50, %v184_v51  ;;  %v242_v62 = vmax.f32 %v234_v56, 0.0 }
 0x26e   :  { %v237_v53 = vpop.f32.mrf.mxu0 }
 0x26f   :  { %v238_v55 = vadd.f32 %v237_v53, %v189_v52  ;;  %v243_v60 = vmax.f32 %v236_v54, 0.0 }
 0x270   :  { %v239_v57 = vpop.f32.mrf.mxu0 }
 0x271   :  { %v240_v58 = vadd.f32 %v239_v57, %v189_v52  ;;  %v244_v59 = vmax.f32 %v238_v55, 0.0 }
 0x273   :  { %v245_v61 = vmax.f32 %v240_v58, 0.0  ;;  %v249_v0 = vpack.c.bf16 %v244_v59, %v242_v62 }
 0x275   :  { %v250_v63 = vpack.c.bf16 %v245_v61, %v243_v60 }
 0x277   :  { %286 = vmatprep.subr.bf16.mxu1 %v250_v63 }
 0x278   :  { %287 = vmatpush1.bf16.msra.mxu1 %v249_v0 }
 0x27b   :  { %433 = vmatmul.mubr.msk.bf16.vlgmr.msra.gmra.mxu1 %vm122_vm2, %v447_v1 }
 0x33b   :  { %v306_v2 = vpop.f32.mrf.mxu1 }
 0x33c   :  { %v307_v9 = vadd.f32 %v306_v2, %v257_v4 }
 0x33d   :  { %v308_v3 = vpop.f32.mrf.mxu1 }
 0x33e   :  { %v309_v7 = vadd.f32 %v308_v3, %v257_v4  ;;  %v315_v15 = vmax.f32 %v307_v9, 0.0 }
 0x33f   :  { %v310_v6 = vpop.f32.mrf.mxu1 }
 0x340   :  { %v311_v8 = vadd.f32 %v310_v6, %v262_v5  ;;  %v316_v13 = vmax.f32 %v309_v7, 0.0 }
 0x341   :  { %v312_v10 = vpop.f32.mrf.mxu1 }
 0x342   :  { %v313_v11 = vadd.f32 %v312_v10, %v262_v5  ;;  %v317_v12 = vmax.f32 %v311_v8, 0.0 }
 0x344   :  { %v318_v14 = vmax.f32 %v313_v11, 0.0  ;;  %v321_v17 = vpack.c.bf16 %v317_v12, %v315_v15 }
 0x346   :  { %v322_v16 = vpack.c.bf16 %v318_v14, %v316_v13 }
 0x348   :  { %347 = vmatprep.subr.bf16.mxu0 %v322_v16 }
 0x349   :  { %348 = vmatpush1.bf16.msra.mxu0 %v321_v17 }
 0x34c   :  { %436 = vmatmul.mubr.msk.bf16.vlgmr.msra.gmra.mxu0 %vm122_vm2, %v434_v18 }
 0x40c   :  { %v367_v24 = vpop.f32.mrf.mxu0 }
 0x40d   :  { %v368_v27 = vadd.f32 %v367_v24, %v328_v25 }
 0x40e   :  { %v369_v26 = vpop.f32.mrf.mxu0 }
 0x40f   :  { %v370_v28 = vadd.f32 %v369_v26, %v328_v25 }
 0x410   :  { %v371_v30 = vpop.f32.mrf.mxu0 }
 0x411   :  { %v376_v31 = vcombine.low %v368_v27, %v370_v28 }
 0x412   :  { %v372_v32 = vpop.f32.mrf.mxu0 }
 0x413   :  { %v383_v33 = vrot.slane %v376_v31, %v382_v29 }
 0x415   :  { %v390_v34 = vrot.slane %v383_v33, %v382_v29 }
 0x417   :  { %396 = vst.msk [vmem:[#allocation2] sm:$0x3] %vm394_vm3, %v390_v34 }
 0x418   :  { %459 = shalt.err (!%p456_p4)
}
 0x419   :  { %406 = dma.vmem_to_hbm [thread:$0]  %s404_s14, 32, %s555_s3, [#allocation3]  }
 0x41a   :  { %468 = dma.done.wait [#allocation3], 32  }
 0x41b   :  { %469 = vsyncadd [#allocation3], 4294967264 }
 0x41c   :  { %410 = vsyncpa [#allocation3], 1 }

</bundles_post_ra>
